<compile_context>
chip_gen: v6e
topology: v6e:2x2x1
jax: 0.10.0
libtpu: 0.0.40
codegen_flags: <defaults>
</compile_context>

<pallas_src>
import math
import jax
import jax.numpy as jnp
from jax import lax
from jax.experimental import pallas as pl
from jax.experimental.pallas import tpu as pltpu

_VMEM_LIMIT = 48 * 1024 * 1024  # safe on v5e/v6e (128 MiB) and v7x (64 MiB)


# ---------------------- 1) fused QKV projection ----------------------

def _qkv_proj_kernel(x_ref, w_ref, b_ref, o_ref):
    # x_ref: (tm, E) input dtype; w_ref: (E, 3E) bf16 (resident);
    # b_ref: (1, 3E) f32 (resident); o_ref: (tm, 3E) bf16.
    x = x_ref[...].astype(w_ref.dtype)                       # bf16 MXU inputs
    y = jnp.dot(x, w_ref[...], preferred_element_type=jnp.float32)
    o_ref[...] = (y + b_ref[...]).astype(o_ref.dtype)


def _qkv_proj(x2d, w_qkv, b_qkv_2d, *, out_dtype, row_tile):
    BT, E = x2d.shape
    tm = min(row_tile, BT)
    assert BT % tm == 0
    return pl.pallas_call(
        _qkv_proj_kernel,
        out_shape=jax.ShapeDtypeStruct((BT, 3 * E), out_dtype),
        grid_spec=pltpu.PrefetchScalarGridSpec(
            num_scalar_prefetch=0,
            grid=(BT // tm,),
            in_specs=[
                pl.BlockSpec((tm, E), lambda i: (i, 0)),
                pl.BlockSpec((E, 3 * E), lambda i: (0, 0)),   # resident weight
                pl.BlockSpec((1, 3 * E), lambda i: (0, 0)),   # resident bias
            ],
            out_specs=pl.BlockSpec((tm, 3 * E), lambda i: (i, 0)),
        ),
        compiler_params=pltpu.CompilerParams(
            dimension_semantics=("parallel",),
            vmem_limit_bytes=_VMEM_LIMIT),
    )(x2d, w_qkv, b_qkv_2d)


# ---------------------- 2) flash attention (causal) ----------------------

def _make_flash_kernel(blk, head_dim):
    def kernel(q_ref, k_ref, v_ref, o_ref):
        # q_ref: (1, blk, D) bf16 (already scaled by 1/sqrt(D) via weight prep)
        # k_ref, v_ref: (1, T, D) bf16 — full kv range for this (batch, head),
        #               constant block index across the q axis -> fetched once.
        # o_ref: (1, blk, D)
        qi = pl.program_id(2)
        q = q_ref[0]                                          # (blk, D)

        def attend(ki, m, l, acc, masked):
            start = pl.multiple_of(ki * blk, blk)
            k = k_ref[0, pl.ds(start, blk), :]                # (blk, D)
            v = v_ref[0, pl.ds(start, blk), :]
            # QK^T: contract last dims of both operands (no explicit transpose)
            s = lax.dot_general(q, k, (((1,), (1,)), ((), ())),
                                preferred_element_type=jnp.float32)  # (blk, blk)
            if masked:
                # diagonal block only: row/col offsets cancel -> local compare
                row = lax.broadcasted_iota(jnp.int32, (blk, blk), 0)
                col = lax.broadcasted_iota(jnp.int32, (blk, blk), 1)
                s = jnp.where(row >= col, s, -1e30)
            m_new = jnp.maximum(m, s.max(axis=-1, keepdims=True))
            alpha = jnp.exp(m - m_new)
            p = jnp.exp(s - m_new)
            l_new = alpha * l + p.sum(axis=-1, keepdims=True)
            acc_new = alpha * acc + jnp.dot(
                p.astype(v.dtype), v, preferred_element_type=jnp.float32)
            return m_new, l_new, acc_new

        m0 = jnp.full((blk, 1), -jnp.inf, jnp.float32)
        l0 = jnp.zeros((blk, 1), jnp.float32)
        a0 = jnp.zeros((blk, head_dim), jnp.float32)

        # below-diagonal kv blocks: no mask work at all
        def body(ki, carry):
            m, l, acc = carry
            return attend(ki, m, l, acc, masked=False)

        m, l, acc = lax.fori_loop(0, qi, body, (m0, l0, a0))
        # diagonal block (always the last contribution, needs the causal mask)
        m, l, acc = attend(qi, m, l, acc, masked=True)

        inv = pl.reciprocal(l, approx=True)                   # EUP slot, ~free
        o_ref[0] = (acc * inv).astype(o_ref.dtype)

    return kernel


def _flash_attention(qkv, *, batch, seq, num_head, head_dim, out_dtype, block):
    # qkv: (B, T, 3E) with E = H*D; q head h = last-axis block h (width D),
    # k head h = block H+h, v head h = block 2H+h.
    B, T, H, D = batch, seq, num_head, head_dim
    E = H * D
    blk = min(block, T)
    assert T % blk == 0
    n_q = T // blk
    kernel = _make_flash_kernel(blk, D)
    return pl.pallas_call(
        kernel,
        out_shape=jax.ShapeDtypeStruct((B, T, E), out_dtype),
        grid_spec=pltpu.PrefetchScalarGridSpec(
            num_scalar_prefetch=0,
            grid=(B, H, n_q),
            in_specs=[
                pl.BlockSpec((1, blk, D), lambda b, h, qi: (b, qi, h)),       # q
                pl.BlockSpec((1, T, D), lambda b, h, qi: (b, 0, H + h)),      # k
                pl.BlockSpec((1, T, D), lambda b, h, qi: (b, 0, 2 * H + h)),  # v
            ],
            # output written directly in [B, T, H*D] layout -> no transpose
            out_specs=pl.BlockSpec((1, blk, D), lambda b, h, qi: (b, qi, h)),
        ),
        compiler_params=pltpu.CompilerParams(
            dimension_semantics=("parallel", "parallel", "parallel")),
    )(qkv, qkv, qkv)


# ---------------------- 3) output projection (no bias) ----------------------

def _final_proj_kernel(x_ref, w_ref, o_ref):
    o_ref[...] = jnp.dot(x_ref[...].astype(w_ref.dtype), w_ref[...],
                         preferred_element_type=jnp.float32).astype(o_ref.dtype)


def _final_proj(x2d, w_final, *, out_dtype, row_tile):
    BT, E = x2d.shape
    tm = min(row_tile, BT)
    assert BT % tm == 0
    return pl.pallas_call(
        _final_proj_kernel,
        out_shape=jax.ShapeDtypeStruct((BT, E), out_dtype),
        grid_spec=pltpu.PrefetchScalarGridSpec(
            num_scalar_prefetch=0,
            grid=(BT // tm,),
            in_specs=[
                pl.BlockSpec((tm, E), lambda i: (i, 0)),
                pl.BlockSpec((E, E), lambda i: (0, 0)),        # resident weight
            ],
            out_specs=pl.BlockSpec((tm, E), lambda i: (i, 0)),
        ),
        compiler_params=pltpu.CompilerParams(
            dimension_semantics=("parallel",),
            vmem_limit_bytes=_VMEM_LIMIT),
    )(x2d, w_final)


# ---------------------- top-level module forward ----------------------

def multi_head_attention(x, w_qkv, b_qkv, w_final, *, num_head, head_dim,
                         attn_block=128, row_tile=512,
                         compute_dtype=jnp.bfloat16):
    B, T, E = x.shape
    assert E == num_head * head_dim
    scale = 1.0 / math.sqrt(head_dim)

    # Weight prep (once): fold 1/sqrt(D) into the q columns of the fused qkv
    # projection and cast weights to bf16 for the MXU fast path.
    col_scale = jnp.concatenate([
        jnp.full((E,), scale, dtype=w_qkv.dtype),
        jnp.ones((2 * E,), dtype=w_qkv.dtype)])
    w_qkv_p = (w_qkv * col_scale[None, :]).astype(compute_dtype)
    b_qkv_p = (b_qkv * col_scale).astype(jnp.float32).reshape(1, 3 * E)
    w_final_p = w_final.astype(compute_dtype)

    # All reshapes below are contiguous (free) — no transpose passes.
    qkv = _qkv_proj(x.reshape(B * T, E), w_qkv_p, b_qkv_p,
                    out_dtype=compute_dtype, row_tile=row_tile)     # (B*T, 3E)
    qkv = qkv.reshape(B, T, 3 * E)

    attn = _flash_attention(qkv, batch=B, seq=T, num_head=num_head,
                            head_dim=head_dim, out_dtype=compute_dtype,
                            block=attn_block)                       # (B, T, E)

    out = _final_proj(attn.reshape(B * T, E), w_final_p,
                      out_dtype=x.dtype, row_tile=row_tile)         # (B*T, E)
    return out.reshape(B, T, E)


# ---------------------- pure-JAX reference (eval mode) ----------------------

def reference_mha(x, w_qkv, b_qkv, w_final, *, num_head, head_dim):
    B, T, E = x.shape
    scale = 1.0 / math.sqrt(head_dim)
    qkv = x @ w_qkv + b_qkv                                        # [B, T, 3E]
    q, k, v = jnp.split(qkv, 3, axis=-1)

    def to_heads(t):
        return t.reshape(B, T, num_head, head_dim).transpose(0, 2, 1, 3)

    q, k, v = to_heads(q), to_heads(k), to_heads(v)                # [B, H, T, D]
    s = jnp.einsum("bhtd,bhsd->bhts", q, k) * scale
    mask = jnp.tril(jnp.ones((T, T), dtype=bool))
    s = jnp.where(mask, s, -jnp.inf)
    p = jax.nn.softmax(s, axis=-1)
    o = jnp.einsum("bhts,bhsd->bhtd", p, v)
    o = o.transpose(0, 2, 1, 3).reshape(B, T, num_head * head_dim)
    return o @ w_final


if __name__ == "__main__":
    # small but shape-consistent config
    B, T = 2, 8
    num_head, head_dim = 4, 16
    embed_dim = num_head * head_dim  # 64

    key = jax.random.PRNGKey(0)
    kx, kw1, kb1, kw2 = jax.random.split(key, 4)

    x = jax.random.normal(kx, (B, T, embed_dim), dtype=jnp.float32)
    # nn.Linear-equivalent parameters in [in, out] layout
    w_qkv = jax.random.normal(kw1, (embed_dim, 3 * embed_dim), jnp.float32) * 0.05
    b_qkv = jax.random.normal(kb1, (3 * embed_dim,), jnp.float32) * 0.02
    w_final = jax.random.normal(kw2, (embed_dim, embed_dim), jnp.float32) * 0.05

    out = multi_head_attention(x, w_qkv, b_qkv, w_final,
                               num_head=num_head, head_dim=head_dim)
    out = jax.block_until_ready(out)

    ref = reference_mha(x, w_qkv, b_qkv, w_final,
                        num_head=num_head, head_dim=head_dim)
    assert out.shape == (B, T, embed_dim)
    # tolerance covers bf16 MXU inputs + EUP approximate reciprocal
    max_err = jnp.max(jnp.abs(out - ref))
    assert jnp.allclose(out, ref, atol=2e-2, rtol=2e-2), (
        f"mismatch vs reference, max abs err {max_err}")

    print("KERNEL_OK")
</pallas_src>

<mosaic_0001>
module attributes {stable_mosaic.version = 11 : i64} {
  func.func @_qkv_proj_kernel(%arg0: i32, %arg1: memref<16x64xf32, #tpu.memory_space<vmem>>, %arg2: memref<64x192xbf16, #tpu.memory_space<vmem>>, %arg3: memref<1x192xf32, #tpu.memory_space<vmem>>, %arg4: memref<16x192xbf16, #tpu.memory_space<vmem>>) attributes {dimension_semantics = [#tpu.dimension_semantics<parallel>], iteration_bounds = array<i64: 1>, scalar_prefetch = 0 : i64, scratch_operands = 0 : i64, tpu.core_type = #tpu.core_type<tc>, window_params = [{transform_indices = @transform_0, window_bounds = array<i64: 16, 64>}, {pipeline_mode = #tpu.pipeline_mode<synchronous>, transform_indices = @transform_1, window_bounds = array<i64: 64, 192>}, {pipeline_mode = #tpu.pipeline_mode<synchronous>, transform_indices = @transform_2, window_bounds = array<i64: 1, 192>}, {transform_indices = @transform_3, window_bounds = array<i64: 16, 192>}]} {
    %c0 = arith.constant 0 : index
    %c0_0 = arith.constant 0 : index
    %0 = vector.load %arg1[%c0, %c0_0] : memref<16x64xf32, #tpu.memory_space<vmem>>, vector<16x64xf32>
    %1 = arith.truncf %0 : vector<16x64xf32> to vector<16x64xbf16>
    %c0_1 = arith.constant 0 : index
    %c0_2 = arith.constant 0 : index
    %2 = vector.load %arg2[%c0_1, %c0_2] : memref<64x192xbf16, #tpu.memory_space<vmem>>, vector<64x192xbf16>
    %cst = arith.constant dense<0.000000e+00> : vector<16x192xf32>
    %3 = tpu.matmul %1, %2, %cst {dimension_numbers = #tpu.dot_dimension_numbers<[1], [0], [0], [1], [0, 0, 1, 1], [], []>} : vector<16x64xbf16>, vector<64x192xbf16>, vector<16x192xf32> -> vector<16x192xf32>
    %c0_3 = arith.constant 0 : index
    %c0_4 = arith.constant 0 : index
    %4 = vector.load %arg3[%c0_3, %c0_4] : memref<1x192xf32, #tpu.memory_space<vmem>>, vector<1x192xf32>
    %5 = vector.broadcast %4 : vector<1x192xf32> to vector<16x192xf32>
    %6 = arith.addf %3, %5 : vector<16x192xf32>
    %7 = arith.truncf %6 : vector<16x192xf32> to vector<16x192xbf16>
    %c0_5 = arith.constant 0 : index
    %c0_6 = arith.constant 0 : index
    %8 = vector.load %arg4[%c0_5, %c0_6] : memref<16x192xbf16, #tpu.memory_space<vmem>>, vector<16x192xbf16>
    tpu.vector_store %arg4[%c0_5, %c0_6], %7 {strides = array<i32>} : memref<16x192xbf16, #tpu.memory_space<vmem>>, vector<16x192xbf16>,
    return
  }
  func.func @transform_0(%arg0: i32) -> (i32, i32) {
    %c0_i32 = arith.constant 0 : i32
    %c0_i32_0 = arith.constant 0 : i32
    return %arg0, %c0_i32 : i32, i32
  }
  func.func @transform_1(%arg0: i32) -> (i32, i32) {
    %c0_i32 = arith.constant 0 : i32
    %c0_i32_0 = arith.constant 0 : i32
    %c0_i32_1 = arith.constant 0 : i32
    return %c0_i32, %c0_i32_0 : i32, i32
  }
  func.func @transform_2(%arg0: i32) -> (i32, i32) {
    %c0_i32 = arith.constant 0 : i32
    %c0_i32_0 = arith.constant 0 : i32
    %c0_i32_1 = arith.constant 0 : i32
    return %c0_i32, %c0_i32_0 : i32, i32
  }
  func.func @transform_3(%arg0: i32) -> (i32, i32) {
    %c0_i32 = arith.constant 0 : i32
    %c0_i32_0 = arith.constant 0 : i32
    return %arg0, %c0_i32 : i32, i32
  }
}

</mosaic_0001>

<bundles_post_ra>
// kernel: tpu_custom_call.1
= control target key start
LH: loop header
LB: loop body
LE: loop exit
PB: predicated region body
PF: predicated region fallthrough
CT: control target
= control target key end

     0   :  { %8 = vsyncpa [#allocation3], 0  ;;  %s333_s0 = inlined_call_operand.hbm [shape: f32[16,64], index: 0, kind: input, shape index: {}]   ;;  %s334_s1 = inlined_call_operand.hbm [shape: bf16[64,192], index: 1, kind: input, shape index: {}]   ;;  %s335_s2 = inlined_call_operand.vmem [shape: f32[1,192], index: 2, kind: input, shape index: {}]   ;;  %s336_s3 = inlined_call_operand.hbm [shape: bf16[16,192], index: 3, kind: output, shape index: {}]  }
   0x1   :  { %9 = vsyncpa [#allocation6], 0 }
   0x2   :  { %10 = vsyncpa [#allocation4], 0  ;;  %s286_s12 = smov [#allocation2]  }
   0x3   :  { %s16_s13 = sshll.u32 %s286_s12, 4  ;;  %s17_s13 = int_to_ptr.vmem [resolvable:$true] %s16_s13 }
   0x4   :  { %s228_s14 = scalar_lea.vmem %s17_s13, 256  ;;  %p233_p1 = scmp.lt.s32.totalorder %s17_s13, %s17_s13 }
   0x5   :  { %p229_p0 = scmp.ne.s32.totalorder %s17_s13, %s228_s14  ;;  %p234_p2 = scmp.lt.s32.totalorder %s228_s14, %s228_s14 }
   0x7   :  { %p235_p3 = por %p234_p2, %p233_p1 }
   0x9   :  { %p236_p4 = pnand %p235_p3, %p229_p0 }
   0xb   :  { %239 = shalt.err (!%p236_p4)
}
   0xc   :  { %s287_s15 = smov 128   ;;  %s288_s16 = smov 8  }
   0xd   :  { %22 = dma.hbm_to_vmem [thread:$0]  %s333_s0, 256, %s17_s13, [#allocation3], %s287_s15, %s287_s15, %s288_s16  }
   0xe   :  { %s289_s19 = smov [#allocation5]  }
   0xf   :  { %s28_s20 = sshll.u32 %s289_s19, 4  ;;  %s29_s20 = int_to_ptr.vmem [resolvable:$true] %s28_s20 }
  0x10   :  { %s248_s21 = scalar_lea.vmem %s29_s20, 1024  ;;  %p253_p6 = scmp.lt.s32.totalorder %s29_s20, %s29_s20 }
  0x11   :  { %p249_p5 = scmp.ne.s32.totalorder %s29_s20, %s248_s21  ;;  %p254_p7 = scmp.lt.s32.totalorder %s248_s21, %s248_s21 }
  0x13   :  { %p255_p8 = por %p254_p7, %p253_p6 }
  0x15   :  { %p256_p9 = pnand %p255_p8, %p249_p5 }
  0x17   :  { %259 = shalt.err (!%p256_p9)
}
  0x18   :  { %34 = dma.hbm_to_vmem [thread:$0]  %s334_s1, 1024, %s29_s20, [#allocation6], %s287_s15, %s287_s15, %s288_s16  }
  0x19   :  { %280 = dma.done.wait [#allocation3], 256  }
  0x1a   :  { %281 = vsyncadd [#allocation3], 4294967040 }
  0x1b   :  { %282 = dma.done.wait [#allocation6], 1024  }
  0x1c   :  { %283 = vsyncadd [#allocation6], 4294966272  ;;  %v290_v0 = vmov 0   ;;  %v208_v1 = vld [vmem:[#allocation5 + $0x34] ss:$8 sps:$4 sm:$0xff]   ;;  %vm107_vm0 = vcmask 523264   ;;  %v57_v12 = vlaneseq }
  0x1d   :  { %143 = vmatprep.mubr.bf16.mxu0 %v290_v0  ;;  %v210_v2 = vld [vmem:[#allocation5 + $0x30] ss:$8 sps:$4 sm:$0xff]   ;;  %119 = vmatprep.subr.bf16.mxu0 %v208_v1  ;;  %v211_v3 = vld [vmem:[#allocation5 + $0x24] ss:$8 sps:$4 sm:$0xff]   ;;  %v213_v4 = vld [vmem:[#allocation5 + $0x20] ss:$8 sps:$4 sm:$0xff]  }
  0x1e   :  { %120 = vmatpush1.bf16.msra.mxu0 %v210_v2  ;;  %v214_v5 = vld [vmem:[#allocation5 + $0x14] ss:$8 sps:$4 sm:$0xff]   ;;  %v216_v6 = vld [vmem:[#allocation5 + $0x10] ss:$8 sps:$4 sm:$0xff]   ;;  %v217_v7 = vld [vmem:[#allocation5 + $0x4] ss:$8 sps:$4 sm:$0xff]  }
  0x1f   :  { %121 = vmatprep.subr.bf16.mxu0 %v211_v3  ;;  %v219_v8 = vld [vmem:[#allocation5] ss:$8 sps:$4 sm:$0xff]   ;;  %v44_v9 = vld [vmem:[#allocation2] sm:$0xff]  ;;  %v45_v10 = vld [vmem:[#allocation2 + $0x8] sm:$0xff]  ;;  %v58_v13 = vshrl.u32 %v57_v12, 7  ;;  %vm166_vm1 = vcmask 1043456  }
  0x20   :  { %v46_v11 = vpack.c.bf16 %v45_v10, %v44_v9  ;;  %v55_v16 = vld [vmem:[%s335_s2] sm:$0x3]  ;;  %vm167_vm2 = vcmask 523268   ;;  %s291_s24 = smov [#allocation7]  }
  0x21   :  { %v59_v14 = vsub.s32 0, %v58_v13  ;;  %v63_v15 = vsub.s32 1, %v58_v13  ;;  %vm168_vm3 = vmor %vm167_vm2, %vm166_vm1  ;;  %s176_s25 = sshll.u32 %s291_s24, 4  ;;  %s177_s25 = int_to_ptr.vmem [resolvable:$true] %s176_s25 }
  0x22   :  { %122 = vmatpush1.bf16.msra.mxu0 %v213_v4  ;;  %s260_s2 = scalar_lea.vmem %s177_s25, 256  ;;  %p265_p11 = scmp.lt.s32.totalorder %s177_s25, %s177_s25 }
  0x23   :  { %123 = vmatprep.subr.bf16.mxu0 %v214_v5  ;;  %v60_v17 = vrot.slane %v55_v16, %v59_v14  ;;  %v64_v18 = vrot.slane %v55_v16, %v63_v15  ;;  %p261_p10 = scmp.ne.s32.totalorder %s177_s25, %s260_s2  ;;  %p266_p12 = scmp.lt.s32.totalorder %s260_s2, %s260_s2 }
  0x25   :  { %p267_p13 = por %p266_p12, %p265_p11 }
  0x26   :  { %124 = vmatpush1.bf16.msra.mxu0 %v216_v6 }
  0x27   :  { %125 = vmatprep.subr.bf16.mxu0 %v217_v7  ;;  %p268_p0 = pnand %p267_p13, %p261_p10 }
  0x2a   :  { %126 = vmatpush1.bf16.msra.mxu0 %v219_v8 }
  0x2d   :  { %197 = vmatmul.mubr.msk.bf16.vlgmr.msra.gmra.mxu0 %vm107_vm0, %v46_v11 }
  0xed   :  { %v145_v19 = vpop.f32.mrf.mxu0 }
  0xee   :  { %v146_v21 = vadd.f32 %v145_v19, %v60_v17 }
  0xef   :  { %v147_v20 = vpop.f32.mrf.mxu0 }
  0xf0   :  { %v148_v22 = vadd.f32 %v147_v20, %v64_v18 }
  0xf1   :  { %v149_v23 = vpop.f32.mrf.mxu0 }
  0xf2   :  { %v200_v24 = vpack.c.bf16 %v148_v22, %v146_v21  ;;  %v150_v26 = vadd.f32 %v149_v23, %v60_v17 }
  0xf3   :  { %v151_v25 = vpop.f32.mrf.mxu0 }
  0xf4   :  { %v152_v27 = vadd.f32 %v151_v25, %v64_v18  ;;  %169 = vst.msk [vmem:[#allocation7] sm:$0xff] %vm168_vm3, %v200_v24 }
  0xf6   :  { %v201_v28 = vpack.c.bf16 %v152_v27, %v150_v26 }
  0xf8   :  { %170 = vst.msk [vmem:[#allocation7 + $0x8] sm:$0xff] %vm168_vm3, %v201_v28 }
  0xf9   :  { %271 = shalt.err (!%p268_p0)
}
  0xfa   :  { %182 = dma.vmem_to_hbm [thread:$0]  %s177_s25, 256, %s336_s3, [#allocation4], %s287_s15, %s287_s15, %s288_s16  }
  0xfb   :  { %284 = dma.done.wait [#allocation4], 256  }
  0xfc   :  { %285 = vsyncadd [#allocation4], 4294967040 }
  0xfd   :  { %186 = vsyncpa [#allocation3], 1 }
  0xfe   :  { %187 = vsyncpa [#allocation6], 1 }
  0xff   :  { %188 = vsyncpa [#allocation4], 1 }

</bundles_post_ra>
